<compile_context>
chip_gen: v7x
topology: tpu7x:2x2x1
jax: 0.10.0
libtpu: 0.0.40
codegen_flags: <defaults>
</compile_context>

<pallas_src>
import jax
import jax.numpy as jnp
from jax.experimental import pallas as pl
from jax.experimental.pallas import tpu as pltpu


# ---------------------------------------------------------------------------
# Pallas kernel: fused Attention-over-Attention core + final dense layer.
# ---------------------------------------------------------------------------
def _aoa_kernel(ctx_ref, asp_ref, w_ref, b_ref, o_ref):
    # ctx_ref: (1, Lc, 2H)   asp_ref: (1, La, 2H)
    # w_ref:   (2H, Ppad)    b_ref:   (1, Ppad)     o_ref: (1, 1, Ppad)
    ctx = ctx_ref[0].astype(jnp.float32)        # (Lc, 2H)
    asp = asp_ref[0].astype(jnp.float32)        # (La, 2H)

    # interaction_mat = ctx_out @ asp_out^T  -> (Lc, La)   (MXU, f32 accum)
    inter = jax.lax.dot_general(
        ctx, asp, (((1,), (1,)), ((), ())),
        preferred_element_type=jnp.float32)

    # alpha = softmax over context positions (torch dim=1 -> local axis 0)
    m0 = jnp.max(inter, axis=0, keepdims=True)
    e0 = jnp.exp(inter - m0)
    alpha = e0 * pl.reciprocal(jnp.sum(e0, axis=0, keepdims=True), approx=True)

    # beta = softmax over aspect positions (torch dim=2 -> local axis 1)
    m1 = jnp.max(inter, axis=1, keepdims=True)
    e1 = jnp.exp(inter - m1)
    beta = e1 * pl.reciprocal(jnp.sum(e1, axis=1, keepdims=True), approx=True)

    # beta_avg = mean over context positions (keepdim)  -> (1, La)
    beta_avg = jnp.mean(beta, axis=0, keepdims=True)

    # gamma = alpha @ beta_avg^T  -> (Lc, 1)   (broadcast-mul + lane reduce)
    gamma = jnp.sum(alpha * beta_avg, axis=1, keepdims=True)

    # weighted_sum = ctx_out^T @ gamma -> (1, 2H)  (broadcast-mul + sublane reduce)
    ws = jnp.sum(ctx * gamma, axis=0, keepdims=True)

    # dense: (1, 2H) @ (2H, Ppad) + b  -> (1, Ppad)  (lane-dense store)
    out = jnp.dot(ws, w_ref[...], preferred_element_type=jnp.float32) + b_ref[...]
    o_ref[0] = out.astype(o_ref.dtype)


def aoa_attention_pallas(ctx_out, asp_out, w_dense, b_dense):
    """ctx_out: (B, Lc, 2H); asp_out: (B, La, 2H); w_dense: (2H, P); b_dense: (P,)."""
    B, Lc, D2 = ctx_out.shape
    _, La, D2a = asp_out.shape
    D2w, P = w_dense.shape
    assert D2a == D2 and D2w == D2

    # Zero-pad the dense output dim to a full multiple of 128 lanes so the
    # kernel's output store is unmasked / lane-dense. Padding sliced off below.
    P_pad = max(128, ((P + 127) // 128) * 128)
    w_pad = jnp.zeros((D2, P_pad), w_dense.dtype).at[:, :P].set(w_dense)
    b_pad = jnp.zeros((1, P_pad), b_dense.dtype).at[0, :P].set(b_dense)

    flops = B * (2 * Lc * La * D2 + 10 * Lc * La + 2 * Lc * D2 + 2 * D2 * P_pad)
    transcendentals = B * (2 * Lc * La + Lc + La)
    bytes_accessed = 4 * (ctx_out.size + asp_out.size + w_pad.size
                          + b_pad.size + B * P_pad)

    out3 = pl.pallas_call(
        _aoa_kernel,
        out_shape=jax.ShapeDtypeStruct((B, 1, P_pad), jnp.float32),
        grid_spec=pltpu.PrefetchScalarGridSpec(
            num_scalar_prefetch=0,
            grid=(B,),
            in_specs=[
                pl.BlockSpec((1, Lc, D2), lambda b: (b, 0, 0)),     # ctx_out tile
                pl.BlockSpec((1, La, D2), lambda b: (b, 0, 0)),     # asp_out tile
                pl.BlockSpec((D2, P_pad), lambda b: (0, 0)),        # dense weight (resident)
                pl.BlockSpec((1, P_pad), lambda b: (0, 0)),         # dense bias (resident)
            ],
            out_specs=pl.BlockSpec((1, 1, P_pad), lambda b: (b, 0, 0)),
        ),
        compiler_params=pltpu.CompilerParams(
            dimension_semantics=("parallel",)),                     # 2 TCs on v7x
        cost_estimate=pl.CostEstimate(
            flops=flops,
            transcendentals=transcendentals,
            bytes_accessed=bytes_accessed),
    )(ctx_out, asp_out, w_pad, b_pad)
    return out3.reshape(B, P_pad)[:, :P]


# ---------------------------------------------------------------------------
# Pure-JAX reference of the AOA core (for in-script validation).
# ---------------------------------------------------------------------------
def aoa_attention_ref(ctx_out, asp_out, w_dense, b_dense):
    inter = jnp.einsum("bld,bmd->blm", ctx_out, asp_out)
    alpha = jax.nn.softmax(inter, axis=1)
    beta = jax.nn.softmax(inter, axis=2)
    beta_avg = jnp.mean(beta, axis=1, keepdims=True)             # (B, 1, La)
    gamma = jnp.einsum("blm,bkm->blk", alpha, beta_avg)          # (B, Lc, 1)
    weighted_sum = jnp.einsum("bld,blk->bkd", ctx_out, gamma)[:, 0, :]
    return weighted_sum @ w_dense + b_dense


# ---------------------------------------------------------------------------
# DynamicLSTM equivalent: packed variable-length bidirectional LSTM (JAX level).
# Matches PyTorch pack_padded_sequence semantics: state stops updating at t>=len,
# outputs beyond each sequence length are zero, backward pass starts at the last
# *valid* token of each sequence.
# ---------------------------------------------------------------------------
def _lstm_scan(x, lengths, w_ih, w_hh, b_ih, b_hh):
    B, L, _ = x.shape
    H = w_hh.shape[1]

    def step(carry, inp):
        h, c = carry
        xt, t = inp
        gates = xt @ w_ih.T + b_ih + h @ w_hh.T + b_hh           # (B, 4H)
        i, f, g, o = jnp.split(gates, 4, axis=-1)                # PyTorch order i,f,g,o
        i = jax.nn.sigmoid(i)
        f = jax.nn.sigmoid(f)
        g = jnp.tanh(g)
        o = jax.nn.sigmoid(o)
        c_new = f * c + i * g
        h_new = o * jnp.tanh(c_new)
        valid = (t < lengths)[:, None]
        h = jnp.where(valid, h_new, h)
        c = jnp.where(valid, c_new, c)
        out_t = jnp.where(valid, h_new, 0.0)
        return (h, c), out_t

    init = (jnp.zeros((B, H), x.dtype), jnp.zeros((B, H), x.dtype))
    xs = jnp.transpose(x, (1, 0, 2))                             # (L, B, E)
    _, outs = jax.lax.scan(step, init, (xs, jnp.arange(L)))
    return jnp.transpose(outs, (1, 0, 2))                        # (B, L, H)


def _reverse_padded(x, lengths):
    """Reverse each sequence within its valid length; zero the padded tail."""
    L = x.shape[1]
    idx = jnp.arange(L)[None, :]
    rev = jnp.clip(lengths[:, None] - 1 - idx, 0, L - 1)
    g = jnp.take_along_axis(x, rev[..., None], axis=1)
    return jnp.where((idx < lengths[:, None])[..., None], g, 0.0)


def bilstm(x, lengths, p):
    fwd = _lstm_scan(x, lengths, p["w_ih"], p["w_hh"], p["b_ih"], p["b_hh"])
    x_rev = _reverse_padded(x, lengths)
    bwd_rev = _lstm_scan(x_rev, lengths, p["w_ih_r"], p["w_hh_r"], p["b_ih_r"], p["b_hh_r"])
    bwd = _reverse_padded(bwd_rev, lengths)
    return jnp.concatenate([fwd, bwd], axis=-1)                  # (B, L, 2H)


# ---------------------------------------------------------------------------
# Full AOA forward.
# ---------------------------------------------------------------------------
def aoa_forward(text_indices, aspect_indices, embedding,
                ctx_params, asp_params, w_dense, b_dense, *, use_pallas=True):
    ctx_len = jnp.sum(text_indices != 0, axis=1)
    asp_len = jnp.sum(aspect_indices != 0, axis=1)
    ctx = jnp.take(embedding, text_indices, axis=0)              # embedding lookup
    asp = jnp.take(embedding, aspect_indices, axis=0)
    ctx_out = bilstm(ctx, ctx_len, ctx_params)                   # (B, Lc, 2H)
    asp_out = bilstm(asp, asp_len, asp_params)                   # (B, La, 2H)
    if use_pallas:
        return aoa_attention_pallas(ctx_out, asp_out, w_dense, b_dense)
    return aoa_attention_ref(ctx_out, asp_out, w_dense, b_dense)


# ---------------------------------------------------------------------------
# Example / self-check.
# ---------------------------------------------------------------------------
def _make_indices(key, B, L, lengths, vocab):
    vals = jax.random.randint(key, (B, L), 1, vocab)
    mask = jnp.arange(L)[None, :] < jnp.asarray(lengths)[:, None]
    return jnp.where(mask, vals, 0).astype(jnp.int32)


def _lstm_params(key, E, H, scale):
    ks = jax.random.split(key, 8)

    def w(k, shape):
        return jax.random.normal(k, shape, jnp.float32) * scale

    return dict(
        w_ih=w(ks[0], (4 * H, E)), w_hh=w(ks[1], (4 * H, H)),
        b_ih=w(ks[2], (4 * H,)), b_hh=w(ks[3], (4 * H,)),
        w_ih_r=w(ks[4], (4 * H, E)), w_hh_r=w(ks[5], (4 * H, H)),
        b_ih_r=w(ks[6], (4 * H,)), b_hh_r=w(ks[7], (4 * H,)),
    )


if __name__ == "__main__":
    # Small shapes consistent with the module: batch=2, context seq=16,
    # aspect seq=8, embed_dim=32, hidden_dim=64 (so 2H = 128 -> lane-dense),
    # polarities_dim=3, vocab=32.
    B, Lc, La = 2, 16, 8
    V, E, H, P = 32, 32, 64, 3

    key = jax.random.PRNGKey(0)
    k_emb, k_ti, k_ai, k_cl, k_al, k_w, k_b = jax.random.split(key, 7)

    embedding = jax.random.normal(k_emb, (V, E), jnp.float32) * 0.5
    embedding = embedding.at[0].set(0.0)                         # pad token row

    text_indices = _make_indices(k_ti, B, Lc, [16, 11], V)       # variable lengths
    aspect_indices = _make_indices(k_ai, B, La, [8, 5], V)

    scale = 1.0 / float(jnp.sqrt(H))
    ctx_params = _lstm_params(k_cl, E, H, scale)
    asp_params = _lstm_params(k_al, E, H, scale)
    w_dense = jax.random.normal(k_w, (2 * H, P), jnp.float32) * 0.1
    b_dense = jax.random.normal(k_b, (P,), jnp.float32) * 0.1

    out = aoa_forward(text_indices, aspect_indices, embedding,
                      ctx_params, asp_params, w_dense, b_dense, use_pallas=True)
    out = jax.block_until_ready(out)

    ref = aoa_forward(text_indices, aspect_indices, embedding,
                      ctx_params, asp_params, w_dense, b_dense, use_pallas=False)

    assert out.shape == (B, P)
    assert jnp.allclose(out, ref, atol=3e-3, rtol=3e-3), "mismatch vs reference"

    print("KERNEL_OK")
</pallas_src>

<mosaic_0001>
module attributes {stable_mosaic.version = 11 : i64} {
  func.func @_aoa_kernel(%arg0: i32, %arg1: memref<1x16x128xf32, #tpu.memory_space<vmem>>, %arg2: memref<1x8x128xf32, #tpu.memory_space<vmem>>, %arg3: memref<128x128xf32, #tpu.memory_space<vmem>>, %arg4: memref<1x128xf32, #tpu.memory_space<vmem>>, %arg5: memref<1x1x128xf32, #tpu.memory_space<vmem>>) attributes {dimension_semantics = [#tpu.dimension_semantics<parallel>], iteration_bounds = array<i64: 2>, scalar_prefetch = 0 : i64, scratch_operands = 0 : i64, tpu.core_type = #tpu.core_type<tc>, window_params = [{transform_indices = @transform_0, window_bounds = array<i64: 1, 16, 128>}, {transform_indices = @transform_1, window_bounds = array<i64: 1, 8, 128>}, {pipeline_mode = #tpu.pipeline_mode<synchronous>, transform_indices = @transform_2, window_bounds = array<i64: 128, 128>}, {pipeline_mode = #tpu.pipeline_mode<synchronous>, transform_indices = @transform_3, window_bounds = array<i64: 1, 128>}, {transform_indices = @transform_4, window_bounds = array<i64: 1, 1, 128>}]} {
    %c0 = arith.constant 0 : index
    %c0_0 = arith.constant 0 : index
    %c0_1 = arith.constant 0 : index
    %0 = vector.load %arg1[%c0, %c0_0, %c0_1] : memref<1x16x128xf32, #tpu.memory_space<vmem>>, vector<1x16x128xf32>
    %1 = vector.shape_cast %0 : vector<1x16x128xf32> to vector<16x128xf32>
    %c0_2 = arith.constant 0 : index
    %c0_3 = arith.constant 0 : index
    %c0_4 = arith.constant 0 : index
    %2 = vector.load %arg2[%c0_2, %c0_3, %c0_4] : memref<1x8x128xf32, #tpu.memory_space<vmem>>, vector<1x8x128xf32>
    %3 = vector.shape_cast %2 : vector<1x8x128xf32> to vector<8x128xf32>
    %cst = arith.constant dense<0.000000e+00> : vector<16x8xf32>
    %4 = tpu.matmul %1, %3, %cst {dimension_numbers = #tpu.dot_dimension_numbers<[1], [1], [0], [0], [0, 0, 1, 0], [], []>} : vector<16x128xf32>, vector<8x128xf32>, vector<16x8xf32> -> vector<16x8xf32>
    %cst_5 = arith.constant dense<0xFF800000> : vector<8xf32>
    %5 = vector.multi_reduction <maximumf>, %4, %cst_5 [0] : vector<16x8xf32> to vector<8xf32>
    %6 = vector.shape_cast %5 : vector<8xf32> to vector<1x8xf32>
    %7 = vector.broadcast %6 : vector<1x8xf32> to vector<16x8xf32>
    %8 = arith.subf %4, %7 : vector<16x8xf32>
    %9 = math.exp %8 : vector<16x8xf32>
    %cst_6 = arith.constant dense<0.000000e+00> : vector<8xf32>
    %10 = vector.multi_reduction <add>, %9, %cst_6 [0] : vector<16x8xf32> to vector<8xf32>
    %11 = vector.shape_cast %10 : vector<8xf32> to vector<1x8xf32>
    %12 = tpu.reciprocal %11 {approx = true} : vector<1x8xf32> -> vector<1x8xf32>
    %13 = vector.broadcast %12 : vector<1x8xf32> to vector<16x8xf32>
    %14 = arith.mulf %9, %13 : vector<16x8xf32>
    %cst_7 = arith.constant dense<0xFF800000> : vector<16xf32>
    %15 = vector.multi_reduction <maximumf>, %4, %cst_7 [1] : vector<16x8xf32> to vector<16xf32>
    %16 = vector.shape_cast %15 : vector<16xf32> to vector<16x1xf32>
    %17 = vector.broadcast %16 : vector<16x1xf32> to vector<16x8xf32>
    %18 = arith.subf %4, %17 : vector<16x8xf32>
    %19 = math.exp %18 : vector<16x8xf32>
    %cst_8 = arith.constant dense<0.000000e+00> : vector<16xf32>
    %20 = vector.multi_reduction <add>, %19, %cst_8 [1] : vector<16x8xf32> to vector<16xf32>
    %21 = vector.shape_cast %20 : vector<16xf32> to vector<16x1xf32>
    %22 = tpu.reciprocal %21 {approx = true} : vector<16x1xf32> -> vector<16x1xf32>
    %23 = vector.broadcast %22 : vector<16x1xf32> to vector<16x8xf32>
    %24 = arith.mulf %19, %23 : vector<16x8xf32>
    %cst_9 = arith.constant dense<0.000000e+00> : vector<8xf32>
    %25 = vector.multi_reduction <add>, %24, %cst_9 [0] : vector<16x8xf32> to vector<8xf32>
    %26 = vector.shape_cast %25 : vector<8xf32> to vector<1x8xf32>
    %cst_10 = arith.constant 1.600000e+01 : f32
    %27 = vector.broadcast %cst_10 : f32 to vector<1x8xf32>
    %28 = arith.divf %26, %27 : vector<1x8xf32>
    %29 = vector.broadcast %28 : vector<1x8xf32> to vector<16x8xf32>
    %30 = arith.mulf %14, %29 : vector<16x8xf32>
    %cst_11 = arith.constant dense<0.000000e+00> : vector<16xf32>
    %31 = vector.multi_reduction <add>, %30, %cst_11 [1] : vector<16x8xf32> to vector<16xf32>
    %32 = vector.shape_cast %31 : vector<16xf32> to vector<16x1xf32>
    %33 = vector.broadcast %32 : vector<16x1xf32> to vector<16x128xf32>
    %34 = arith.mulf %1, %33 : vector<16x128xf32>
    %cst_12 = arith.constant dense<0.000000e+00> : vector<128xf32>
    %35 = vector.multi_reduction <add>, %34, %cst_12 [0] : vector<16x128xf32> to vector<128xf32>
    %36 = vector.shape_cast %35 : vector<128xf32> to vector<1x128xf32>
    %c0_13 = arith.constant 0 : index
    %c0_14 = arith.constant 0 : index
    %37 = vector.load %arg3[%c0_13, %c0_14] : memref<128x128xf32, #tpu.memory_space<vmem>>, vector<128x128xf32>
    %cst_15 = arith.constant dense<0.000000e+00> : vector<1x128xf32>
    %38 = tpu.matmul %36, %37, %cst_15 {dimension_numbers = #tpu.dot_dimension_numbers<[1], [0], [0], [1], [0, 0, 1, 1], [], []>} : vector<1x128xf32>, vector<128x128xf32>, vector<1x128xf32> -> vector<1x128xf32>
    %c0_16 = arith.constant 0 : index
    %c0_17 = arith.constant 0 : index
    %39 = vector.load %arg4[%c0_16, %c0_17] : memref<1x128xf32, #tpu.memory_space<vmem>>, vector<1x128xf32>
    %40 = arith.addf %38, %39 : vector<1x128xf32>
    %c0_18 = arith.constant 0 : index
    %c0_19 = arith.constant 0 : index
    %c0_20 = arith.constant 0 : index
    %41 = vector.load %arg5[%c0_18, %c0_19, %c0_20] : memref<1x1x128xf32, #tpu.memory_space<vmem>>, vector<1x1x128xf32>
    %42 = vector.shape_cast %41 : vector<1x1x128xf32> to vector<1x128xf32>
    %43 = vector.shape_cast %40 : vector<1x128xf32> to vector<1x1x128xf32>
    tpu.vector_store %arg5[%c0_18, %c0_19, %c0_20], %43 {strides = array<i32>} : memref<1x1x128xf32, #tpu.memory_space<vmem>>, vector<1x1x128xf32>,
    return
  }
  func.func @transform_0(%arg0: i32) -> (i32, i32, i32) {
    %c0_i32 = arith.constant 0 : i32
    %c0_i32_0 = arith.constant 0 : i32
    %c0_i32_1 = arith.constant 0 : i32
    return %arg0, %c0_i32, %c0_i32_0 : i32, i32, i32
  }
  func.func @transform_1(%arg0: i32) -> (i32, i32, i32) {
    %c0_i32 = arith.constant 0 : i32
    %c0_i32_0 = arith.constant 0 : i32
    %c0_i32_1 = arith.constant 0 : i32
    return %arg0, %c0_i32, %c0_i32_0 : i32, i32, i32
  }
  func.func @transform_2(%arg0: i32) -> (i32, i32) {
    %c0_i32 = arith.constant 0 : i32
    %c0_i32_0 = arith.constant 0 : i32
    %c0_i32_1 = arith.constant 0 : i32
    return %c0_i32, %c0_i32_0 : i32, i32
  }
  func.func @transform_3(%arg0: i32) -> (i32, i32) {
    %c0_i32 = arith.constant 0 : i32
    %c0_i32_0 = arith.constant 0 : i32
    %c0_i32_1 = arith.constant 0 : i32
    return %c0_i32, %c0_i32_0 : i32, i32
  }
  func.func @transform_4(%arg0: i32) -> (i32, i32, i32) {
    %c0_i32 = arith.constant 0 : i32
    %c0_i32_0 = arith.constant 0 : i32
    %c0_i32_1 = arith.constant 0 : i32
    return %arg0, %c0_i32, %c0_i32_0 : i32, i32, i32
  }
}

</mosaic_0001>

<bundles_post_ra>
// kernel: tpu_custom_call.1
= control target key start
LH: loop header
LB: loop body
LE: loop exit
PB: predicated region body
PF: predicated region fallthrough
CT: control target
= control target key end

     0   :  { %s1272_s0 = inlined_call_operand.hbm [shape: f32[2,16,128], index: 0, kind: input, shape index: {}]   ;;  %s1273_s1 = inlined_call_operand.hbm [shape: f32[2,8,128], index: 1, kind: input, shape index: {}]   ;;  %s1274_s2 = inlined_call_operand.hbm [shape: f32[128,128], index: 2, kind: input, shape index: {}]   ;;  %s1275_s3 = inlined_call_operand.vmem [shape: f32[1,128], index: 3, kind: input, shape index: {}]   ;;  %s1276_s4 = inlined_call_operand.hbm [shape: f32[2,1,128], index: 4, kind: output, shape index: {}]  }
   0x1   :  { %1281 = sst [smem:[#allocation13_spill]] %s1272_s0 }
   0x2   :  { %1282 = sst [smem:[#allocation14_spill]] %s1274_s2 }
   0x3   :  { %9 = vsyncpa [#allocation3], 0 }
   0x4   :  { %11 = vsyncpa [#allocation3 + $0x1], 0 }
   0x5   :  { %12 = vsyncpa [#allocation6], 0 }
   0x6   :  { %14 = vsyncpa [#allocation6 + $0x1], 0 }
   0x7   :  { %15 = vsyncpa [#allocation4], 0 }
   0x8   :  { %17 = vsyncpa [#allocation4 + $0x1], 0  ;;  %s999_s15 = smov 0   ;;  %s1001_s16 = smov 0  }
   0x9   :  { %s1003_s17 = smov 0   ;;  %s1005_s18 = smov 0  }
   0xa LB: > { %s1020_s19 = sadd.s32 4294967295, %s963_s18   ;;  %s619_s20 = sadd.s32 4294967294, %s963_s18   ;;  %s963_s18 = sphi %s1005_s18, %s1302_s18   ;;  %s959_s17 = sphi %s1003_s17, %s1301_s17   ;;  %s955_s16 = sphi %s1001_s16, %s1300_s16   ;;  %s951_s15 = sphi %s999_s15, %s1299_s15  }
   0xb   : > { %p43_p0 = scmp.ne.s32.totalorder %s955_s16, %s951_s15  ;;  %p1277_p1 = scmp.eq.s32.totalorder %s1020_s19, 0 }
   0xc   : > { %p141_p3 = scmp.eq.s32.totalorder %s619_s20, 1  ;;  %p620_p5 = scmp.ge.s32.totalorder %s963_s18, 1 }
   0xd   : > { %p1029_p4 = por %p1277_p1, %p43_p0  ;;  %p148_p7 = scmp.lt.s32.totalorder %s963_s18, 3 }
   0xe   : > { %p1034_p6 = por %p141_p3, %p43_p0  ;;  %s965_s24 = smov [#allocation7]  }
   0xf   : > { %s1283_s21 = scalar_select %p1029_p4, 1, 0 }
  0x10   : > { %s1284_s22 = scalar_select %p1034_p6, 1, 0 }
  0x11   : > { %p1039_p8 = pnand %p620_p5, %p148_p7  ;;  %s160_s25 = sshll.u32 %s965_s24, 4  ;;  %s1043_s25 = int_to_ptr.vmem [resolvable:$true] %s160_s25 }
  0x12   : > { %s1055_s27 = sadd.s32 1, %s963_s18   ;;  %s30_s28 = sadd.s32 1, %s959_s17 }
  0x13   : > { %s1285_s23 = scalar_select %p1039_p8, 1, 0 }
  0x14   : > { %p730_p9 = pneg %p1039_p8  ;;  %s27_s29 = ssub.s32 %s963_s18, %s1055_s27 }
  0x15   : > { %s1287_s2 = sld [smem:[#allocation14_spill]] }
  0x16   : > { %p1050_p11 = pnand %p730_p9, %p1277_p1 }
  0x18   : > { %p803_p13 = pneg %p1050_p11 }
  0x1b   : > { %s801_s6 = scalar_lea.hbm %s1287_s2, 2048 }
  0x1c   : > { %p802_p12 = scmp.ne.s32.totalorder %s1287_s2, %s801_s6  ;;  %p808_p5 = scmp.lt.u32.totalorder %s801_s6, %s1287_s2 }
  0x1e   : > { %p804_p0 = pnand %p803_p13, %p802_p12 }
  0x20   : > { %p805_p3 = pneg %p804_p0 }
  0x22   : > { %p810_p7 = pnand %p808_p5, %p805_p3 }
  0x24   : > { %813 = shalt.err (!%p810_p7)
}
  0x25   : > { %s814_s11 = scalar_lea.vmem %s1043_s25, 2048  ;;  %p822_p2 = scmp.lt.s32.totalorder %s1043_s25, %s1043_s25 }
  0x26   : > { %p815_p9 = scmp.ne.s32.totalorder %s1043_s25, %s814_s11  ;;  %p823_p6 = scmp.lt.s32.totalorder %s814_s11, %s814_s11 }
  0x28   : > { %p817_p10 = pnand %p815_p9, %p803_p13  ;;  %p824_p4 = por %p823_p6, %p822_p2 }
  0x2a   : > { %p818_p1 = pneg %p817_p10 }
  0x2c   : > { %p825_p8 = pnand %p824_p4, %p818_p1 }
  0x2e   : > { %828 = shalt.err (!%p825_p8)
}
  0x2f   : > { %s966_s12 = smov 128   ;;  %s967_s13 = smov 8  }
  0x30   : > { %733 = dma.hbm_to_vmem [thread:$0]  (!%p1050_p11), %s1287_s2, 2048, %s1043_s25, [#allocation6], %s966_s12, %s966_s12, %s967_s13  }
  0x31   : > { %p28_p1 = scmp.eq.s32.totalorder %s27_s29, 0  ;;  %p37_p2 = scmp.ne.s32.totalorder %s959_s17, %s955_s16 }
  0x32   : > { %p38_p4 = scmp.eq.s32.totalorder %s963_s18, 0  ;;  %p746_p6 = scmp.lt.s32.totalorder %s963_s18, 2 }
  0x33   : > { %s1089_s24 = scalar_select %p28_p1, %s959_s17, %s30_s28  }
  0x34   : > { %p39_p8 = por %p38_p4, %p37_p2  ;;  %p1288_p10 = scmp.eq.s32.totalorder %s1020_s19, 1 }
  0x35   : > { %s1098_s26 = sand.u32 1, %s959_s17   ;;  %s635_s5 = sshll.u32 %s963_s18, 8 }
  0x36   : > { %p1093_p12 = por %p1288_p10, %p37_p2  ;;  %s623_s6 = sshll.u32 %s1098_s26, 4 }
  0x37   : > { %s1290_s0 = sld [smem:[#allocation13_spill]]  ;;  %s181_s28 = scalar_lea.vmem [#allocation2], %s623_s6 }
  0x38   : > { %s1289_s30 = scalar_select %p1093_p12, 1, 0 }
  0x39   : > { %s188_s8 = sshll.u32 %s181_s28, 4  ;;  %p1107_p11 = pnand %p746_p6, %p39_p8  ;;  %s1111_s8 = int_to_ptr.vmem [resolvable:$true] %s188_s8 }
  0x3a   : > { %s198_s10 = sand.u32 1, %s963_s18   ;;  %s178_s11 = scalar_lea.sflag [#allocation3], %s1098_s26 }
  0x3b   : > { %p831_p0 = pneg %p1107_p11 }
  0x3d   : > { %s1105_s29 = scalar_lea.hbm %s1290_s0, %s635_s5  ;;  %s834_s6 = scalar_lea.hbm %s1290_s0, 512 }
  0x3e   : > { %s829_s14 = scalar_lea.hbm %s1105_s29, 256  ;;  %p835_p7 = scmp.lt.u32.totalorder %s1105_s29, %s1290_s0 }
  0x3f   : > { %p830_p13 = scmp.ne.s32.totalorder %s1105_s29, %s829_s14  ;;  %p836_p9 = scmp.lt.u32.totalorder %s834_s6, %s829_s14 }
  0x40   : > { %p838_p2 = scmp.lt.u32.totalorder %s829_s14, %s1105_s29 }
  0x41   : > { %p832_p3 = pnand %p831_p0, %p830_p13  ;;  %p837_p1 = por %p836_p9, %p835_p7 }
  0x43   : > { %p833_p5 = pneg %p832_p3  ;;  %p839_p4 = por %p838_p2, %p837_p1 }
  0x45   : > { %p840_p6 = pnand %p839_p4, %p833_p5 }
  0x47   : > { %843 = shalt.err (!%p840_p6)
}
  0x48   : > { %s844_s28 = scalar_lea.vmem %s1111_s8, 256  ;;  %s968_s20 = smov [#allocation2]  }
  0x49   : > { %p845_p8 = scmp.ne.s32.totalorder %s1111_s8, %s844_s28  ;;  %s849_s5 = sshll.u32 %s968_s20, 4  ;;  %s850_s5 = int_to_ptr.vmem [resolvable:$false] %s849_s5 }
  0x4a   : > { %s851_s25 = scalar_lea.vmem %s850_s5, 512  ;;  %p852_p3 = scmp.lt.s32.totalorder %s1111_s8, %s850_s5 }
  0x4b   : > { %p847_p10 = pnand %p845_p8, %p831_p0  ;;  %p853_p7 = scmp.lt.s32.totalorder %s851_s25, %s844_s28 }
  0x4d   : > { %p848_p13 = pneg %p847_p10  ;;  %p854_p9 = por %p853_p7, %p852_p3 }
  0x4f   : > { %p855_p1 = pnand %p854_p9, %p848_p13 }
  0x51   : > { %858 = shalt.err (!%p855_p1)
}
  0x52   : > { %737 = dma.hbm_to_vmem [thread:$0]  (!%p1107_p11), %s1105_s29, 256, %s1111_s8, %s178_s11, %s966_s12, %s966_s12, %s967_s13  }
  0x53   : > { %s626_s14 = sshll.u32 %s1098_s26, 3  ;;  %s627_s6 = sshll.u32 %s963_s18, 7 }
  0x54   : > { %s1150_s20 = scalar_lea.hbm %s1273_s1, %s627_s6  ;;  %s202_s5 = scalar_lea.vmem [#allocation5], %s626_s14 }
  0x55   : > { %s209_s25 = sshll.u32 %s202_s5, 4  ;;  %s199_s0 = scalar_lea.sflag [#allocation6], %s198_s10  ;;  %s210_s25 = int_to_ptr.vmem [resolvable:$true] %s209_s25 }
  0x56   : > { %s859_s2 = scalar_lea.hbm %s1150_s20, 128  ;;  %s864_s26 = scalar_lea.hbm %s1273_s1, 256 }
  0x57   : > { %p860_p5 = scmp.ne.s32.totalorder %s1150_s20, %s859_s2  ;;  %p865_p6 = scmp.lt.u32.totalorder %s1150_s20, %s1273_s1 }
  0x58   : > { %p866_p8 = scmp.lt.u32.totalorder %s864_s26, %s859_s2  ;;  %p868_p13 = scmp.lt.u32.totalorder %s859_s2, %s1150_s20 }
  0x59   : > { %p862_p2 = pnand %p860_p5, %p831_p0 }
  0x5a   : > { %p867_p10 = por %p866_p8, %p865_p6 }
  0x5b   : > { %p863_p4 = pneg %p862_p2 }
  0x5c   : > { %p869_p3 = por %p868_p13, %p867_p10 }
  0x5e   : > { %p870_p7 = pnand %p869_p3, %p863_p4 }
  0x60   : > { %873 = shalt.err (!%p870_p7)
}
  0x61   : > { %s874_s10 = scalar_lea.vmem %s210_s25, 128  ;;  %s969_s11 = smov [#allocation5]  }
  0x62   : > { %p875_p9 = scmp.ne.s32.totalorder %s210_s25, %s874_s10  ;;  %s879_s14 = sshll.u32 %s969_s11, 4  ;;  %s880_s14 = int_to_ptr.vmem [resolvable:$false] %s879_s14 }
  0x63   : > { %s881_s6 = scalar_lea.vmem %s880_s14, 256  ;;  %p882_p2 = scmp.lt.s32.totalorder %s210_s25, %s880_s14 }
  0x64   : > { %p877_p1 = pnand %p875_p9, %p831_p0  ;;  %p883_p12 = scmp.lt.s32.totalorder %s881_s6, %s874_s10 }
  0x66   : > { %p878_p5 = pneg %p877_p1  ;;  %p884_p6 = por %p883_p12, %p882_p2 }
  0x68   : > { %p885_p8 = pnand %p884_p6, %p878_p5 }
  0x6a   : > { %888 = shalt.err (!%p885_p8)
}
  0x6b   : > { %740 = dma.hbm_to_vmem [thread:$0]  (!%p1107_p11), %s1150_s20, 128, %s210_s25, %s199_s0  }
  0x6c   : > { %p1292_p4 = scmp.ne.s32.totalorder %s1285_s23, 0 }
  0x6d   : > { %s1176_s2 = sand.u32 (!%p1292_p4), 1, %s955_s16   ;;  %p1293_p0 = scmp.ne.s32.totalorder (!%p1292_p4), %s1283_s21, 0 }
  0x6e   : > { %218 = sbr.rel (%p1292_p4) target bundleno = 1066 (0x42a), region = 36  ;;  %s629_s7 = sshll.u32 (!%p1292_p4), %s1176_s2, 4 }
  0x6f   : > { %s221_s28 = scalar_lea.sflag (!%p1292_p4), [#allocation3], %s1176_s2  ;;  %s224_s5 = scalar_lea.vmem (!%p1292_p4), [#allocation2], %s629_s7 }
  0x75   : > { %934 = dma.done.wait (%p1293_p0), %s221_s28, 256  }
  0x76   : > { %936 = vsyncadd (%p1293_p0), %s221_s28, 4294967040  ;;  %s229_s0 = sand.u32 1, %s1020_s19   ;;  %s630_s23 = sshll.u32 %s1176_s2, 3 }
  0x77   : > { %s230_s9 = scalar_lea.sflag [#allocation6], %s229_s0  ;;  %s233_s20 = scalar_lea.vmem [#allocation5], %s630_s23 }
  0x78   : > { %938 = dma.done.wait (%p1293_p0), %s230_s9, 128  }
  0x79   : > { %940 = vsyncadd (%p1293_p0), %s230_s9, 4294967168  ;;  %p1294_p12 = scmp.eq.s32.totalorder %s1020_s19, 0 }
  0x7b   : > { %942 = dma.done.wait (%p1294_p12), [#allocation6], 2048   ;;  %p1295_p11 = pmov %p1294_p12 }
  0x7c   : > { %v268_v0 = vld [vmem:[%s233_s20] sm:$0xff]  ;;  %v1197_v2 = vld [vmem:[%s224_s5 + $0x8] sm:$0xff]  ;;  %vm344_vm0 = vcmask 64512   ;;  %v420_v42 = vld [vmem:[#allocation7] sm:$0xff]  ;;  %v970_v45 = vmov 0.0|0.0   ;;  %vm971_vm1 = vmmov 0  }
  0x7d   : > { %944 = vsyncadd (%p1295_p11), [#allocation6], 4294965248  ;;  %v1194_v1 = vld [vmem:[%s224_s5] sm:$0xff]  ;;  %656 = vmatprep.subr.mxu0 %v268_v0  ;;  %v421_v43 = vld [vmem:[#allocation7 + $0x8] sm:$0xff]  ;;  %696 = vmatprep.subr.bf16.mxu1 %v970_v45  ;;  %s632_s12 = sshll.u32 %s1020_s19, 4  ;;  %s265_s13 = scalar_lea.vmem [#allocation8], %s1176_s2 }
  0x7e   : > { %658 = vmatprep.mubr.f32.mxu0 %v1194_v1  ;;  %657 = vmatpush3.xpose.msra.mxu0 %v268_v0  ;;  %v422_v44 = vld [vmem:[#allocation7 + $0x10] sm:$0xff]  ;;  %v697_v46 = vpack.c.bf16 %v421_v43, %v420_v42  ;;  %v423_v47 = vld [vmem:[#allocation7 + $0x18] sm:$0xff]  ;;  %v424_v49 = vld [vmem:[#allocation7 + $0x20] sm:$0xff]  ;;  %s521_s26 = sshll.u32 %s265_s13, 4  ;;  %s1228_s10 = scalar_lea.hbm %s1276_s4, %s632_s12  ;;  %s1230_s26 = int_to_ptr.vmem [resolvable:$true] %s521_s26 }
  0x7f   : > { %v700_v48 = vpack.c.bf16 %v423_v47, %v422_v44  ;;  %v425_v50 = vld [vmem:[#allocation7 + $0x28] sm:$0xff]  ;;  %v426_v52 = vld [vmem:[#allocation7 + $0x30] sm:$0xff]  ;;  %v427_v53 = vld [vmem:[#allocation7 + $0x38] sm:$0xff]  ;;  %s509_s11 = scalar_lea.sflag [#allocation4], %s1176_s2  ;;  %s889_s14 = scalar_lea.vmem %s1230_s26, 16 }
  0x80   : > { %698 = vmatpush3.bf16.msra.mxu1 %v697_v46  ;;  %v703_v51 = vpack.c.bf16 %v425_v50, %v424_v49  ;;  %v706_v54 = vpack.c.bf16 %v427_v53, %v426_v52  ;;  %p890_p10 = scmp.ne.s32.totalorder %s1230_s26, %s889_s14  ;;  %p1296_p13 = scmp.ne.s32.totalorder %s1289_s30, 0 }
  0x81   : > { %659 = vmatmul.mubr.f32.vlgmr.msra.gmra.mrb[0].mxu0 %v1197_v2  ;;  %699 = vmatprep.subr.bf16.mxu1 %v970_v45  ;;  %s973_s19 = smov [#allocation8]  }
  0x82   : > { %p891_p3 = pnand %p890_p10, %p1296_p13  ;;  %s893_s6 = sshll.u32 %s973_s19, 4  ;;  %s894_s6 = int_to_ptr.vmem [resolvable:$false] %s893_s6 }
  0x83   : > { %s895_s7 = scalar_lea.vmem %s894_s6, 32  ;;  %p896_p9 = scmp.lt.s32.totalorder %s1230_s26, %s894_s6 }
  0x84   : > { %701 = vmatpush3.bf16.msra.mxu1 %v700_v48  ;;  %p892_p7 = pneg %p891_p3  ;;  %p897_p1 = scmp.lt.s32.totalorder %s895_s7, %s889_s14 }
  0x85   : > { %702 = vmatprep.subr.bf16.mxu1 %v970_v45 }
  0x86   : > { %p898_p5 = por %p897_p1, %p896_p9 }
  0x88   : > { %704 = vmatpush3.bf16.msra.mxu1 %v703_v51  ;;  %p899_p2 = pnand %p898_p5, %p892_p7 }
  0x89   : > { %705 = vmatprep.subr.bf16.mxu1 %v970_v45 }
  0x8c   : > { %707 = vmatpush3.bf16.msra.mxu1 %v706_v54 }
  0x8d   : > { %708 = vmatprep.subr.bf16.mxu1 %v970_v45 }
 0x154   : > { %v660_v3 = vpop.f32.mrb[0].mxu0 }
 0x155   : > { %v335_v4 = vpop.f32.mrb[1].mxu0  ;;  %v346_v5 = vsel %vm344_vm0, %v660_v3, -inf }
 0x156   : > { %v345_v6 = vsel %vm344_vm0, %v335_v4, -inf }
 0x157   : > { %372 = vmax.xlane.f32.xlu0 %v345_v6  ;;  %v347_v7 = vmax.f32 %v345_v6, %v346_v5 }
 0x159   : > { %v348_v8 = vrot.slane %v347_v7, 4 }
 0x15b   : > { %374 = vmax.xlane.f32.xlu0 %v346_v5  ;;  %v349_v9 = vmax.f32 %v347_v7, %v348_v8 }
 0x15d   : > { %v350_v10 = vrot.slane %v349_v9, 2 }
 0x15f   : > { %v351_v11 = vmax.f32 %v349_v9, %v350_v10 }
 0x161   : > { %v352_v12 = vrot.slane %v351_v11, 1 }
 0x163   : > { %v353_v13 = vmax.f32 %v351_v11, %v352_v12 }
 0x165   : > { %v354_v14 = vsub.f32 %v335_v4, %v353_v13  ;;  %v355_v15 = vsub.f32 %v660_v3, %v353_v13  ;;  %v428_v13 = vld [vmem:[#allocation7 + $0x40] sm:$0xff] }
 0x167   : > { %v356_v16 = vmul.f32 1.442695, %v354_v14  ;;  %v358_v17 = vmul.f32 1.442695, %v355_v15  ;;  %v429_v14 = vld [vmem:[#allocation7 + $0x48] sm:$0xff] }
 0x168   : > { %v709_v15 = vpack.c.bf16 %v429_v14, %v428_v13 }
 0x169   : > { %787 = vpow2.f32 %v356_v16  ;;  %v430_v16 = vld [vmem:[#allocation7 + $0x50] sm:$0xff] }
 0x16a   : > { %789 = vpow2.f32 %v358_v17  ;;  %710 = vmatpush3.bf16.msra.mxu1 %v709_v15  ;;  %v431_v17 = vld [vmem:[#allocation7 + $0x58] sm:$0xff] }
 0x16b   : > { %711 = vmatprep.subr.bf16.mxu1 %v970_v45 }
 0x173   : > { %v788_v18 = vpop.eup %787 }
 0x174   : > { %v790_v19 = vpop.eup %789  ;;  %v360_v20 = vsel %vm344_vm0, %v788_v18, 0.0 }
 0x175   : > { %v361_v21 = vsel %vm344_vm0, %v790_v19, 0.0 }
 0x176   : > { %v362_v22 = vadd.f32 %v361_v21, %v360_v20  ;;  %v433_v20 = vld [vmem:[#allocation7 + $0x68] sm:$0xff] }
 0x178   : > { %v363_v23 = vrot.slane %v362_v22, 4 }
 0x17a   : > { %v364_v24 = vadd.f32 %v363_v23, %v362_v22  ;;  %v434_v22 = vld [vmem:[#allocation7 + $0x70] sm:$0xff]  ;;  %v435_v23 = vld [vmem:[#allocation7 + $0x78] sm:$0xff] }
 0x17c   : > { %v365_v25 = vrot.slane %v364_v24, 2 }
 0x17e   : > { %v366_v26 = vadd.f32 %v365_v25, %v364_v24  ;;  %v972_v24 = vmov 0.0   ;;  %v718_v25 = vpack.c.bf16 %v435_v23, %v434_v22 }
 0x17f   : > { %693 = vmatprep.mubr.msk.f32.mxu1 %vm971_vm1, %v972_v24 }
 0x180   : > { %v367_v27 = vrot.slane %v366_v26, 1 }
 0x182   : > { %v368_v28 = vadd.f32 %v367_v27, %v366_v26 }
 0x184   : > { %791 = vrcp.f32 %v368_v28 }
 0x18e   : > { %v792_v29 = vpop.eup %791 }
 0x18f   : > { %v371_v30 = vmul.f32 %v792_v29, %v790_v19  ;;  %v370_v31 = vmul.f32 %v792_v29, %v788_v18  ;;  %v712_v18 = vpack.c.bf16 %v431_v17, %v430_v16  ;;  %v432_v19 = vld [vmem:[#allocation7 + $0x60] sm:$0xff] }
 0x190   : > { %v715_v21 = vpack.c.bf16 %v433_v20, %v432_v19 }
 0x191   : > { %713 = vmatpush3.bf16.msra.mxu1 %v712_v18 }
 0x192   : > { %714 = vmatprep.subr.bf16.mxu1 %v970_v45 }
 0x195   : > { %716 = vmatpush3.bf16.msra.mxu1 %v715_v21 }
 0x196   : > { %717 = vmatprep.subr.bf16.mxu1 %v970_v45 }
 0x199   : > { %719 = vmatpush3.bf16.msra.mxu1 %v718_v25 }
 0x1e4   : > { %v373_v32 = vpop.xlane.xlu0 %372 }
 0x1e5   : > { %v376_v33 = vsub.f32 %v335_v4, %v373_v32 }
 0x1e7   : > { %v378_v34 = vmul.f32 1.442695, %v376_v33 }
 0x1e8   : > { %v375_v35 = vpop.xlane.xlu0 %374 }
 0x1e9   : > { %793 = vpow2.f32 %v378_v34  ;;  %v377_v36 = vsub.f32 %v660_v3, %v375_v35 }
 0x1eb   : > { %v380_v37 = vmul.f32 1.442695, %v377_v36 }
 0x1ed   : > { %795 = vpow2.f32 %v380_v37  ;;  %v436_v37 = vld [vmem:[%s1275_s3] sm:$0x1] }
 0x1f3   : > { %v794_v38 = vpop.eup %793 }
 0x1f4   : > { %v382_v39 = vsel %vm344_vm0, %v794_v38, 0.0 }
 0x1f5   : > { %383 = vadd.xlane.f32.xlu1 %v382_v39 }
 0x1f7   : > { %v796_v40 = vpop.eup %795 }
 0x1f8   : > { %v385_v41 = vsel %vm344_vm0, %v796_v40, 0.0 }
 0x1f9   : > { %386 = vadd.xlane.f32.xlu1 %v385_v41 }
 0x282   : > { %v384_v55 = vpop.xlane.xlu1 %383 }
 0x283   : > { %797 = vrcp.f32 %v384_v55 }
 0x286   : > { %v387_v56 = vpop.xlane.xlu1 %386 }
 0x287   : > { %799 = vrcp.f32 %v387_v56 }
 0x28d   : > { %v798_v57 = vpop.eup %797 }
 0x28e   : > { %v390_v58 = vmul.f32 %v798_v57, %v794_v38 }
 0x290   : > { %v392_v61 = vsel %vm344_vm0, %v390_v58, 0.0 }
 0x291   : > { %v800_v59 = vpop.eup %799 }
 0x292   : > { %v391_v60 = vmul.f32 %v800_v59, %v796_v40 }
 0x294   : > { %v393_v62 = vsel %vm344_vm0, %v391_v60, 0.0 }
 0x295   : > { %v394_v63 = vadd.f32 %v393_v62, %v392_v61 }
 0x297   : > { %v395_v0 = vrot.slane %v394_v63, 4 }
 0x299   : > { %v396_v3 = vadd.f32 %v395_v0, %v394_v63 }
 0x29b   : > { %v397_v4 = vrot.slane %v396_v3, 2 }
 0x29d   : > { %v398_v5 = vadd.f32 %v397_v4, %v396_v3 }
 0x29f   : > { %v399_v6 = vrot.slane %v398_v5, 1 }
 0x2a1   : > { %v400_v7 = vadd.f32 %v399_v6, %v398_v5 }
 0x2a3   : > { %v402_v8 = vmul.f32 0.0625, %v400_v7 }
 0x2a5   : > { %v404_v9 = vmul.f32 %v402_v8, %v371_v30  ;;  %v403_v10 = vmul.f32 %v402_v8, %v370_v31 }
 0x2a7   : > { %v408_v11 = vsel %vm344_vm0, %v404_v9, 0.0  ;;  %v405_v12 = vsel %vm344_vm0, %v403_v10, 0.0 }
 0x2a8   : > { %409 = vadd.xlane.f32.xlu1 %v408_v11  ;;  %406 = vadd.xlane.f32.xlu0 %v405_v12 }
 0x335   : > { %v410_v26 = vpop.xlane.xlu1 %409  ;;  %v407_v27 = vpop.xlane.xlu0 %406 }
 0x336   : > { %v412_v28 = vmul.f32 %v410_v26, %v1197_v2  ;;  %v411_v29 = vmul.f32 %v407_v27, %v1194_v1 }
 0x338   : > { %v413_v30 = vadd.f32 %v412_v28, %v411_v29 }
 0x33a   : > { %v414_v31 = vrot.slane %v413_v30, 4 }
 0x33c   : > { %v415_v32 = vadd.f32 %v414_v31, %v413_v30 }
 0x33e   : > { %v416_v33 = vrot.slane %v415_v32, 2 }
 0x340   : > { %v417_v34 = vadd.f32 %v416_v33, %v415_v32 }
 0x342   : > { %v418_v35 = vrot.slane %v417_v34, 1 }
 0x344   : > { %v419_v36 = vadd.f32 %v418_v35, %v417_v34 }
 0x346   : > { %694 = vmatmul.mubr.f32.vlgmr.msra.gmra.mrb[0].mxu1 %v419_v36 }
 0x419   : > { %v503_v2 = vpop.f32.mrb[0].mxu1 }
 0x41a   : > { %v504_v38 = vadd.f32 %v503_v2, %v436_v37  ;;  %v695_v1 = vpop.f32.mrb[1].mxu1 }
 0x41c   : > { %507 = vst [vmem:[%s265_s13] sm:$0x1] %v504_v38 }
 0x41d   : > { %902 = shalt.err (!%p899_p2)
}
 0x41e   : > { %s903_s2 = scalar_lea.hbm %s1228_s10, 16  ;;  %s907_s0 = scalar_lea.hbm %s1276_s4, 32 }
 0x41f   : > { %p904_p6 = scmp.ne.s32.totalorder %s1228_s10, %s903_s2  ;;  %p908_p0 = scmp.lt.u32.totalorder %s1228_s10, %s1276_s4 }
 0x420   : > { %p909_p12 = scmp.lt.u32.totalorder %s907_s0, %s903_s2  ;;  %p911_p10 = scmp.lt.u32.totalorder %s903_s2, %s1228_s10 }
 0x421   : > { %p905_p8 = pnand %p904_p6, %p1296_p13 }
 0x422   : > { %p910_p11 = por %p909_p12, %p908_p0 }
 0x423   : > { %p906_p4 = pneg %p905_p8 }
 0x424   : > { %p912_p3 = por %p911_p10, %p910_p11 }
 0x426   : > { %p913_p7 = pnand %p912_p3, %p906_p4 }
 0x428   : > { %916 = shalt.err (!%p913_p7)
}
 0x429   : > { %728 = dma.vmem_to_hbm [thread:$0]  (%p1296_p13), %s1230_s26, 16, %s1228_s10, %s509_s11  }
 0x42a PF: > { %s533_s20 = sand.u32 1, %s951_s15   ;;  %p1297_p9 = scmp.ne.s32.totalorder %s1284_s22, 0 }
 0x42b   : > { %p1298_p1 = scmp.ge.s32.totalorder %s963_s18, 2  ;;  %s534_s21 = scalar_lea.sflag [#allocation4], %s533_s20 }
 0x42d   : > { %p742_p5 = pnand %p1298_p1, %p1297_p9 }
 0x42f   : > { %946 = dma.done.wait (!%p742_p5), %s534_s21, 16  }
 0x430   : > { %948 = vsyncadd (!%p742_p5), %s534_s21, 4294967280  ;;  %p20_p2 = scmp.ge.s32.totalorder %s1055_s27, 4   ;;  %s1299_s15 = smov %s955_s16 }
 0x431   : > { %s1300_s16 = smov %s959_s17  ;;  %s1301_s17 = smov %s1089_s24 }
 0x432   : > { %s1302_s18 = smov %s1055_s27  ;;  %22 = sbr.rel (!%p20_p2) target bundleno = 10 (0xa), region = 98 }
 0x439   :  { %538 = vsyncpa [#allocation3], 1 }
 0x43a   :  { %540 = vsyncpa [#allocation3 + $0x1], 1 }
 0x43b   :  { %541 = vsyncpa [#allocation6], 1 }
 0x43c   :  { %543 = vsyncpa [#allocation6 + $0x1], 1 }
 0x43d   :  { %544 = vsyncpa [#allocation4], 1 }
 0x43e   :  { %546 = vsyncpa [#allocation4 + $0x1], 1 }

</bundles_post_ra>
